<compile_context>
chip_gen: v5e
topology: v5e:2x2
jax: 0.10.0
libtpu: 0.0.40
codegen_flags: <defaults>
</compile_context>

<pallas_src>
import jax
import jax.numpy as jnp
from jax.experimental import pallas as pl
from jax.experimental.pallas import tpu as pltpu


_VMEM_CAP_BYTES = 56 * 1024 * 1024        # stays inside v7x's 64 MiB physical VMEM
_RESIDENT_SLAB_BUDGET = 16 * 1024 * 1024  # single-copy budget for the resident k-slab


def _round_up(x, m):
    return (x + m - 1) // m * m


def _largest_divisor_tile(n, cap):
    """Largest multiple of 128 that divides n (n is a multiple of 128) and is <= cap."""
    cap = min(cap, n)
    t = max((cap // 128) * 128, 128)
    while t > 128 and n % t != 0:
        t -= 128
    return t


def _vmem_limit(footprint_bytes):
    return int(min(max(footprint_bytes + (8 << 20), 32 << 20), _VMEM_CAP_BYTES))


def _compiler_params(semantics, vmem_bytes):
    return pltpu.CompilerParams(
        dimension_semantics=semantics,
        vmem_limit_bytes=vmem_bytes,
    )


# ------------------------------------------------------------------ kernels --

def feature_transform_kernel(x_ref, w_ref, o_ref):
    # xw = x @ W1 for one row tile (bf16 inputs, f32 MXU accumulation).
    o_ref[...] = jnp.dot(
        x_ref[...], w_ref[...], preferred_element_type=jnp.float32
    ).astype(o_ref.dtype)


def make_gcn_layer_kernel(tk, resident_slab):
    # o[i] = relu( sum_k A[i,k] @ XW[k] + b ) @ W_next
    def kernel(a_ref, xw_ref, b_ref, w_next_ref, o_ref, acc_ref):
        k = pl.program_id(1)

        @pl.when(k == 0)
        def _init():
            acc_ref[...] = jnp.zeros_like(acc_ref)

        if resident_slab:
            start = pl.multiple_of(k * tk, tk)
            xw_k = xw_ref[pl.ds(start, tk), :]
        else:
            xw_k = xw_ref[...]

        acc_ref[...] += jnp.dot(a_ref[...], xw_k, preferred_element_type=jnp.float32)

        @pl.when(k == pl.num_programs(1) - 1)
        def _epilogue():
            h = jnp.maximum(acc_ref[...] + b_ref[...], 0.0)   # ReLU (dropout = identity)
            o_ref[...] = jnp.dot(
                h.astype(w_next_ref.dtype), w_next_ref[...],
                preferred_element_type=jnp.float32,
            ).astype(o_ref.dtype)

    return kernel


def make_gcn_final_kernel(tk, resident_slab):
    # out[i] = log_softmax( relu(sum_k A[i,k] @ HW[k] + b2) @ Wc^T + bc )
    def kernel(a_ref, hw_ref, b_ref, wc_ref, bc_ref, o_ref, acc_ref):
        k = pl.program_id(1)

        @pl.when(k == 0)
        def _init():
            acc_ref[...] = jnp.zeros_like(acc_ref)

        if resident_slab:
            start = pl.multiple_of(k * tk, tk)
            hw_k = hw_ref[pl.ds(start, tk), :]
        else:
            hw_k = hw_ref[...]

        acc_ref[...] += jnp.dot(a_ref[...], hw_k, preferred_element_type=jnp.float32)

        @pl.when(k == pl.num_programs(1) - 1)
        def _epilogue():
            h2 = jnp.maximum(acc_ref[...] + b_ref[...], 0.0)  # ReLU (dropout = identity)
            # Keep the classifier + log_softmax epilogue in f32: padded classes
            # carry a -1e30 bias and must stay finite/exact through the LSE.
            logits = jnp.dot(
                h2.astype(wc_ref.dtype), wc_ref[...],
                preferred_element_type=jnp.float32,
            ) + bc_ref[...]
            m = jnp.max(logits, axis=1, keepdims=True)
            lse = m + jnp.log(jnp.sum(jnp.exp(logits - m), axis=1, keepdims=True))
            o_ref[...] = logits - lse

    return kernel


# ----------------------------------------------------------------- wrappers --

def feature_transform(x, w, *, tm):
    n_pad, f_in = x.shape
    f_out = w.shape[1]
    footprint = 2 * tm * f_in * 2 + 2 * f_in * f_out * 2 + 2 * tm * f_out * 2
    return pl.pallas_call(
        feature_transform_kernel,
        out_shape=jax.ShapeDtypeStruct((n_pad, f_out), jnp.bfloat16),
        grid_spec=pltpu.PrefetchScalarGridSpec(
            num_scalar_prefetch=0,
            grid=(n_pad // tm,),
            in_specs=[
                pl.BlockSpec((tm, f_in), lambda i: (i, 0)),
                pl.BlockSpec((f_in, f_out), lambda i: (0, 0)),
            ],
            out_specs=pl.BlockSpec((tm, f_out), lambda i: (i, 0)),
        ),
        compiler_params=_compiler_params(("parallel",), _vmem_limit(footprint)),
        cost_estimate=pl.CostEstimate(
            flops=2 * n_pad * f_in * f_out,
            transcendentals=0,
            bytes_accessed=2 * (n_pad * f_in + f_in * f_out + n_pad * f_out),
        ),
    )(x, w)


def gcn_aggregate_transform(a, xw, b, w_next, *, tm, tk):
    n_pad = a.shape[0]
    f = xw.shape[1]
    f_out = w_next.shape[1]

    resident = (n_pad * f * 2) <= _RESIDENT_SLAB_BUDGET
    if resident:
        xw_spec = pl.BlockSpec((n_pad, f), lambda i, k: (0, 0))   # fetched once, resident
        xw_vmem = 2 * n_pad * f * 2
        xw_hbm = n_pad * f * 2
    else:
        xw_spec = pl.BlockSpec((tk, f), lambda i, k: (k, 0))      # streamed per k-step
        xw_vmem = 2 * tk * f * 2
        xw_hbm = (n_pad // tm) * n_pad * f * 2

    footprint = (
        2 * tm * tk * 2          # A_hat tile double buffer
        + xw_vmem                # XW slab
        + 2 * f * 4              # bias
        + 2 * f * f_out * 2      # fused next-layer weight
        + 2 * tm * f_out * 2     # output tile
        + tm * f * 4             # f32 accumulator scratch
    )

    return pl.pallas_call(
        make_gcn_layer_kernel(tk, resident),
        out_shape=jax.ShapeDtypeStruct((n_pad, f_out), jnp.bfloat16),
        grid_spec=pltpu.PrefetchScalarGridSpec(
            num_scalar_prefetch=0,
            grid=(n_pad // tm, n_pad // tk),
            in_specs=[
                pl.BlockSpec((tm, tk), lambda i, k: (i, k)),      # A_hat tile (streamed)
                xw_spec,                                          # XW slab
                pl.BlockSpec((1, f), lambda i, k: (0, 0)),        # bias (resident)
                pl.BlockSpec((f, f_out), lambda i, k: (0, 0)),    # fused next-layer weight
            ],
            out_specs=pl.BlockSpec((tm, f_out), lambda i, k: (i, 0)),
            scratch_shapes=[pltpu.VMEM((tm, f), jnp.float32)],
        ),
        compiler_params=_compiler_params(("parallel", "arbitrary"),
                                         _vmem_limit(footprint)),
        cost_estimate=pl.CostEstimate(
            flops=2 * n_pad * n_pad * f + 2 * n_pad * f * f_out,
            transcendentals=0,
            bytes_accessed=2 * n_pad * n_pad + xw_hbm
            + 2 * f * f_out + 2 * n_pad * f_out,
        ),
    )(a, xw, b, w_next)


def gcn_aggregate_classify(a, hw, b, wc, bc, *, tm, tk):
    n_pad = a.shape[0]
    f = hw.shape[1]
    c = wc.shape[1]

    resident = (n_pad * f * 2) <= _RESIDENT_SLAB_BUDGET
    if resident:
        hw_spec = pl.BlockSpec((n_pad, f), lambda i, k: (0, 0))
        hw_vmem = 2 * n_pad * f * 2
        hw_hbm = n_pad * f * 2
    else:
        hw_spec = pl.BlockSpec((tk, f), lambda i, k: (k, 0))
        hw_vmem = 2 * tk * f * 2
        hw_hbm = (n_pad // tm) * n_pad * f * 2

    footprint = (
        2 * tm * tk * 2
        + hw_vmem
        + 2 * f * 4
        + 2 * f * c * 2
        + 2 * c * 4
        + 2 * tm * c * 4
        + tm * f * 4
    )

    return pl.pallas_call(
        make_gcn_final_kernel(tk, resident),
        out_shape=jax.ShapeDtypeStruct((n_pad, c), jnp.float32),
        grid_spec=pltpu.PrefetchScalarGridSpec(
            num_scalar_prefetch=0,
            grid=(n_pad // tm, n_pad // tk),
            in_specs=[
                pl.BlockSpec((tm, tk), lambda i, k: (i, k)),      # A_hat tile (streamed)
                hw_spec,                                          # H1W2 slab
                pl.BlockSpec((1, f), lambda i, k: (0, 0)),        # bias b2 (resident)
                pl.BlockSpec((f, c), lambda i, k: (0, 0)),        # classifier weight
                pl.BlockSpec((1, c), lambda i, k: (0, 0)),        # classifier bias
            ],
            out_specs=pl.BlockSpec((tm, c), lambda i, k: (i, 0)),
            scratch_shapes=[pltpu.VMEM((tm, f), jnp.float32)],
        ),
        compiler_params=_compiler_params(("parallel", "arbitrary"),
                                         _vmem_limit(footprint)),
        cost_estimate=pl.CostEstimate(
            flops=2 * n_pad * n_pad * f + 2 * n_pad * f * c,
            transcendentals=n_pad * (c + 1),
            bytes_accessed=2 * n_pad * n_pad + hw_hbm + 2 * f * c + 4 * n_pad * c,
        ),
    )(a, hw, b, wc, bc)


def gcn2_forward(x, a_hat, w1, b1, w2, b2, wc_t, bc, *, tile_m=None, tile_k=None):
    """Full GCN2 forward. Pads N to >=256 rows, feature/class dims to 128 lanes."""
    n, nfeat = x.shape
    nhid = w1.shape[1]
    nclass = wc_t.shape[1]

    # Pad N to a multiple of 256 so the row grid always splits >= 2 ways
    # (keeps both v7x TensorCores busy through the "parallel" row axis).
    n_pad = _round_up(n, 256)
    nfeat_p = _round_up(nfeat, 128)
    nhid_p = _round_up(nhid, 128)
    nclass_p = _round_up(nclass, 128)

    # Tile selection: big row tiles (<=512, but never collapsing the row grid
    # below 2) and a wide contracting tile (<=1024 lanes) for large contiguous
    # A_hat DMAs and few per-grid-step overheads.
    if tile_m is None:
        tile_m = _largest_divisor_tile(n_pad, min(512, n_pad // 2))
    if tile_k is None:
        tile_k = _largest_divisor_tile(n_pad, 1024)
    # Feature-transform row tile: large, but keep the x tile under ~8 MiB/buffer.
    ft_rows_cap = max(128, ((8 << 20) // (nfeat_p * 2)) // 128 * 128)
    tm_ft = _largest_divisor_tile(n_pad, min(1024, ft_rows_cap))

    bf16 = jnp.bfloat16
    # astype BEFORE pad: avoids an extra O(N^2) f32 read/write pass over A_hat.
    a_p = jnp.pad(a_hat.astype(bf16), ((0, n_pad - n), (0, n_pad - n)))
    x_p = jnp.pad(x.astype(bf16), ((0, n_pad - n), (0, nfeat_p - nfeat)))
    w1_p = jnp.pad(w1.astype(bf16), ((0, nfeat_p - nfeat), (0, nhid_p - nhid)))
    w2_p = jnp.pad(w2.astype(bf16), ((0, nhid_p - nhid), (0, nhid_p - nhid)))
    wc_p = jnp.pad(wc_t.astype(bf16), ((0, nhid_p - nhid), (0, nclass_p - nclass)))

    b1_p = jnp.pad(b1.reshape(1, -1).astype(jnp.float32), ((0, 0), (0, nhid_p - nhid)))
    b2_p = jnp.pad(b2.reshape(1, -1).astype(jnp.float32), ((0, 0), (0, nhid_p - nhid)))
    # Padded classes get a hugely negative bias so exp() of them is exactly 0
    # and the log_softmax over the padded class axis equals the unpadded one.
    bc_p = jnp.pad(bc.reshape(1, -1).astype(jnp.float32),
                   ((0, 0), (0, nclass_p - nclass)), constant_values=-1e30)

    xw1 = feature_transform(x_p, w1_p, tm=tm_ft)                                # (N_pad, nhid_p) bf16
    h1w2 = gcn_aggregate_transform(a_p, xw1, b1_p, w2_p, tm=tile_m, tk=tile_k)  # (N_pad, nhid_p) bf16
    out_p = gcn_aggregate_classify(a_p, h1w2, b2_p, wc_p, bc_p,
                                   tm=tile_m, tk=tile_k)                        # (N_pad, nclass_p) f32
    return out_p[:n, :nclass]


# --------------------------------------------------------------- graph glue --

def build_a_hat(edge_idx, num_nodes):
    """Dense D^-1/2 (A + I) D^-1/2, matching PyG GCNConv gcn_norm (add self-loops)."""
    src = edge_idx[0]
    dst = edge_idx[1]
    a = jnp.zeros((num_nodes, num_nodes), jnp.float32)
    a = a.at[dst, src].add(1.0)              # A[i, j] = #edges j -> i
    a = a + jnp.eye(num_nodes, dtype=jnp.float32)
    deg = a.sum(axis=1)
    dis = jnp.where(deg > 0, jax.lax.rsqrt(deg), 0.0)
    return dis[:, None] * a * dis[None, :]


def reference_forward(x, a_hat, w1, b1, w2, b2, wc_t, bc):
    h1 = jnp.maximum(a_hat @ (x @ w1) + b1, 0.0)
    h2 = jnp.maximum(a_hat @ (h1 @ w2) + b2, 0.0)
    logits = h2 @ wc_t + bc
    return jax.nn.log_softmax(logits, axis=1)


if __name__ == "__main__":
    # Small shapes; N=200 pads to 256 rows so the row grid splits into >= 2 tiles.
    N, NFEAT, NHID, NCLASS = 200, 48, 32, 7

    key = jax.random.PRNGKey(0)
    k_x, k_w1, k_b1, k_w2, k_b2, k_wc, k_bc, k_e = jax.random.split(key, 8)

    x = jax.random.normal(k_x, (N, NFEAT), dtype=jnp.float32)

    # Deterministic small graph: undirected ring plus a few deterministic chords.
    ring_src = jnp.arange(N, dtype=jnp.int32)
    ring_dst = ((jnp.arange(N) + 1) % N).astype(jnp.int32)
    extra_src = jax.random.randint(k_e, (64,), 0, N).astype(jnp.int32)
    extra_dst = ((extra_src * 7 + 3) % N).astype(jnp.int32)
    src = jnp.concatenate([ring_src, ring_dst, extra_src, extra_dst])
    dst = jnp.concatenate([ring_dst, ring_src, extra_dst, extra_src])
    edge_idx = jnp.stack([src, dst]).astype(jnp.int32)        # [2, E]
    a_hat = build_a_hat(edge_idx, N)

    # Parameters (shapes follow GCNConv / nn.Linear).
    w1 = jax.random.normal(k_w1, (NFEAT, NHID), jnp.float32) * 0.1
    b1 = jax.random.normal(k_b1, (NHID,), jnp.float32) * 0.05
    w2 = jax.random.normal(k_w2, (NHID, NHID), jnp.float32) * 0.1
    b2 = jax.random.normal(k_b2, (NHID,), jnp.float32) * 0.05
    wc_t = jax.random.normal(k_wc, (NHID, NCLASS), jnp.float32) * 0.1   # W_c^T
    bc = jax.random.normal(k_bc, (NCLASS,), jnp.float32) * 0.1

    ref = reference_forward(x, a_hat, w1, b1, w2, b2, wc_t, bc)

    # 1) auto-selected (large) tiles — the production configuration.
    out = gcn2_forward(x, a_hat, w1, b1, w2, b2, wc_t, bc)
    out = jax.block_until_ready(out)
    assert out.shape == (N, NCLASS)
    max_err = float(jnp.max(jnp.abs(out - ref)))
    assert jnp.allclose(out, ref, atol=3e-2, rtol=3e-2), f"max abs err {max_err}"

    # 2) small explicit tiles — exercises the multi-step k-reduction + resident
    #    slab slicing path (grid (2, 2) at N_pad = 256).
    out2 = gcn2_forward(x, a_hat, w1, b1, w2, b2, wc_t, bc, tile_m=128, tile_k=128)
    out2 = jax.block_until_ready(out2)
    max_err2 = float(jnp.max(jnp.abs(out2 - ref)))
    assert jnp.allclose(out2, ref, atol=3e-2, rtol=3e-2), f"max abs err {max_err2}"

    print("KERNEL_OK")
</pallas_src>

<mosaic_0001>
module attributes {stable_mosaic.version = 11 : i64} {
  func.func @feature_transform_kernel(%arg0: i32, %arg1: memref<256x128xbf16, #tpu.memory_space<vmem>>, %arg2: memref<128x128xbf16, #tpu.memory_space<vmem>>, %arg3: memref<256x128xbf16, #tpu.memory_space<vmem>>) attributes {dimension_semantics = [#tpu.dimension_semantics<parallel>], iteration_bounds = array<i64: 1>, scalar_prefetch = 0 : i64, scratch_operands = 0 : i64, tpu.core_type = #tpu.core_type<tc>, window_params = [{transform_indices = @transform_0, window_bounds = array<i64: 256, 128>}, {pipeline_mode = #tpu.pipeline_mode<synchronous>, transform_indices = @transform_1, window_bounds = array<i64: 128, 128>}, {transform_indices = @transform_2, window_bounds = array<i64: 256, 128>}]} {
    %c0 = arith.constant 0 : index
    %c0_0 = arith.constant 0 : index
    %0 = vector.load %arg1[%c0, %c0_0] : memref<256x128xbf16, #tpu.memory_space<vmem>>, vector<256x128xbf16>
    %c0_1 = arith.constant 0 : index
    %c0_2 = arith.constant 0 : index
    %1 = vector.load %arg2[%c0_1, %c0_2] : memref<128x128xbf16, #tpu.memory_space<vmem>>, vector<128x128xbf16>
    %cst = arith.constant dense<0.000000e+00> : vector<256x128xf32>
    %2 = tpu.matmul %0, %1, %cst {dimension_numbers = #tpu.dot_dimension_numbers<[1], [0], [0], [1], [0, 0, 1, 1], [], []>} : vector<256x128xbf16>, vector<128x128xbf16>, vector<256x128xf32> -> vector<256x128xf32>
    %3 = arith.truncf %2 : vector<256x128xf32> to vector<256x128xbf16>
    %c0_3 = arith.constant 0 : index
    %c0_4 = arith.constant 0 : index
    %4 = vector.load %arg3[%c0_3, %c0_4] : memref<256x128xbf16, #tpu.memory_space<vmem>>, vector<256x128xbf16>
    tpu.vector_store %arg3[%c0_3, %c0_4], %3 {strides = array<i32>} : memref<256x128xbf16, #tpu.memory_space<vmem>>, vector<256x128xbf16>,
    return
  }
  func.func @transform_0(%arg0: i32) -> (i32, i32) {
    %c0_i32 = arith.constant 0 : i32
    %c0_i32_0 = arith.constant 0 : i32
    return %arg0, %c0_i32 : i32, i32
  }
  func.func @transform_1(%arg0: i32) -> (i32, i32) {
    %c0_i32 = arith.constant 0 : i32
    %c0_i32_0 = arith.constant 0 : i32
    %c0_i32_1 = arith.constant 0 : i32
    return %c0_i32, %c0_i32_0 : i32, i32
  }
  func.func @transform_2(%arg0: i32) -> (i32, i32) {
    %c0_i32 = arith.constant 0 : i32
    %c0_i32_0 = arith.constant 0 : i32
    return %arg0, %c0_i32 : i32, i32
  }
}

</mosaic_0001>

<bundles_post_ra>
// kernel: tpu_custom_call.1
= control target key start
LH: loop header
LB: loop body
LE: loop exit
PB: predicated region body
PF: predicated region fallthrough
CT: control target
= control target key end

     0   :  { %7 = vsyncpa [#allocation3], 0  ;;  %s769_s0 = inlined_call_operand.hbm [shape: bf16[256,128], index: 0, kind: input, shape index: {}]   ;;  %s770_s1 = inlined_call_operand.hbm [shape: bf16[128,128], index: 1, kind: input, shape index: {}]   ;;  %s771_s2 = inlined_call_operand.hbm [shape: bf16[256,128], index: 2, kind: output, shape index: {}]  }
   0x1   :  { %8 = vsyncpa [#allocation6], 0 }
   0x2   :  { %9 = vsyncpa [#allocation4], 0  ;;  %s14_s11 = sshll.u32 %s769_s0, 4  ;;  %s731_s12 = smov [#allocation2]   ;;  %s15_s11 = int_to_ptr.hbm [resolvable:$true] %s14_s11 }
   0x3   :  { %s16_s13 = sshll.u32 %s731_s12, 4  ;;  %s27_s16 = sshll.u32 %s770_s1, 4  ;;  %s17_s13 = int_to_ptr.vmem [resolvable:$true] %s16_s13  ;;  %s28_s16 = int_to_ptr.hbm [resolvable:$true] %s27_s16 }
   0x4   :  { %s732_s17 = smov 64   ;;  %s733_s18 = smov 4  }
   0x5   :  { %22 = dma.hbm_to_vmem [thread:$0]  %s15_s11, 2048, %s17_s13, [#allocation3], %s732_s17, %s732_s17, %s733_s18  }
   0x6   :  { %s734_s19 = smov [#allocation5]  }
   0x7   :  { %s29_s20 = sshll.u32 %s734_s19, 4  ;;  %s30_s20 = int_to_ptr.vmem [resolvable:$true] %s29_s20 }
   0x8   :  { %35 = dma.hbm_to_vmem [thread:$0]  %s28_s16, 1024, %s30_s20, [#allocation6], %s732_s17, %s732_s17, %s733_s18  }
   0x9   :  { %725 = dma.done.wait [#allocation3], 2048  }
   0xa   :  { %726 = vsyncadd [#allocation3], 4294965248 }
   0xb   :  { %727 = dma.done.wait [#allocation6], 1024  }
   0xc   :  { %728 = vsyncadd [#allocation6], 4294966272  ;;  %v528_v0 = vld [vmem:[#allocation5 + $0x38] sm:$0xff]  ;;  %v527_v1 = vld [vmem:[#allocation5 + $0x30] sm:$0xff]  ;;  %s735_s0 = smov [#allocation7]   ;;  %s395_s23 = sshll.u32 %s771_s2, 4  ;;  %s396_s23 = int_to_ptr.hbm [resolvable:$true] %s395_s23 }
   0xd   :  { %236 = vmatpush.bf16.msra.mxu0 %v528_v0  ;;  %624 = vmatpush.bf16.msra.mxu1 %v528_v0  ;;  %v526_v2 = vld [vmem:[#allocation5 + $0x28] sm:$0xff]  ;;  %v525_v3 = vld [vmem:[#allocation5 + $0x20] sm:$0xff]  ;;  %v524_v4 = vld [vmem:[#allocation5 + $0x18] sm:$0xff]  ;;  %s393_s1 = sshll.u32 %s735_s0, 4  ;;  %s394_s1 = int_to_ptr.vmem [resolvable:$true] %s393_s1 }
   0xe   :  { %625 = vmatpush.bf16.msra.mxu2 %v528_v0  ;;  %626 = vmatpush.bf16.msra.mxu3 %v528_v0  ;;  %v523_v5 = vld [vmem:[#allocation5 + $0x10] sm:$0xff]  ;;  %v522_v6 = vld [vmem:[#allocation5 + $0x8] sm:$0xff]  ;;  %v521_v7 = vld [vmem:[#allocation5] sm:$0xff] }
   0xf   :  { %v505_v8 = vld [vmem:[#allocation2] sm:$0xff]  ;;  %v506_v12 = vld [vmem:[#allocation2 + $0x8] sm:$0xff]  ;;  %v507_v16 = vld [vmem:[#allocation2 + $0x10] sm:$0xff] }
  0x10   :  { %v509_v9 = vld [vmem:[#allocation2 + $0x20] sm:$0xff]  ;;  %v510_v13 = vld [vmem:[#allocation2 + $0x28] sm:$0xff]  ;;  %v511_v17 = vld [vmem:[#allocation2 + $0x30] sm:$0xff] }
  0x11   :  { %237 = vmatpush.bf16.msra.mxu0 %v527_v1  ;;  %627 = vmatpush.bf16.msra.mxu1 %v527_v1  ;;  %v513_v10 = vld [vmem:[#allocation2 + $0x40] sm:$0xff]  ;;  %v514_v14 = vld [vmem:[#allocation2 + $0x48] sm:$0xff]  ;;  %v515_v18 = vld [vmem:[#allocation2 + $0x50] sm:$0xff] }
  0x12   :  { %628 = vmatpush.bf16.msra.mxu2 %v527_v1  ;;  %629 = vmatpush.bf16.msra.mxu3 %v527_v1  ;;  %v517_v11 = vld [vmem:[#allocation2 + $0x60] sm:$0xff]  ;;  %v518_v15 = vld [vmem:[#allocation2 + $0x68] sm:$0xff]  ;;  %v519_v19 = vld [vmem:[#allocation2 + $0x70] sm:$0xff] }
  0x13   :  { %v508_v20 = vld [vmem:[#allocation2 + $0x18] sm:$0xff] }
  0x14   :  { %v512_v21 = vld [vmem:[#allocation2 + $0x38] sm:$0xff] }
  0x15   :  { %238 = vmatpush.bf16.msra.mxu0 %v526_v2  ;;  %630 = vmatpush.bf16.msra.mxu1 %v526_v2  ;;  %v516_v22 = vld [vmem:[#allocation2 + $0x58] sm:$0xff] }
  0x16   :  { %631 = vmatpush.bf16.msra.mxu2 %v526_v2  ;;  %632 = vmatpush.bf16.msra.mxu3 %v526_v2  ;;  %v520_v23 = vld [vmem:[#allocation2 + $0x78] sm:$0xff] }
  0x19   :  { %239 = vmatpush.bf16.msra.mxu0 %v525_v3  ;;  %633 = vmatpush.bf16.msra.mxu1 %v525_v3 }
  0x1a   :  { %634 = vmatpush.bf16.msra.mxu2 %v525_v3  ;;  %635 = vmatpush.bf16.msra.mxu3 %v525_v3 }
  0x1d   :  { %240 = vmatpush.bf16.msra.mxu0 %v524_v4  ;;  %636 = vmatpush.bf16.msra.mxu1 %v524_v4 }
  0x1e   :  { %637 = vmatpush.bf16.msra.mxu2 %v524_v4  ;;  %638 = vmatpush.bf16.msra.mxu3 %v524_v4 }
  0x21   :  { %241 = vmatpush.bf16.msra.mxu0 %v523_v5  ;;  %639 = vmatpush.bf16.msra.mxu1 %v523_v5 }
  0x22   :  { %640 = vmatpush.bf16.msra.mxu2 %v523_v5  ;;  %641 = vmatpush.bf16.msra.mxu3 %v523_v5 }
  0x25   :  { %242 = vmatpush.bf16.msra.mxu0 %v522_v6  ;;  %642 = vmatpush.bf16.msra.mxu1 %v522_v6 }
  0x26   :  { %643 = vmatpush.bf16.msra.mxu2 %v522_v6  ;;  %644 = vmatpush.bf16.msra.mxu3 %v522_v6 }
  0x29   :  { %243 = vmatpush.bf16.msra.mxu0 %v521_v7  ;;  %645 = vmatpush.bf16.msra.mxu1 %v521_v7 }
  0x2a   :  { %646 = vmatpush.bf16.msra.mxu2 %v521_v7  ;;  %647 = vmatpush.bf16.msra.mxu3 %v521_v7 }
  0x2c   :  { %244 = vmatmul.bf16.vlgmr.msra.gmra.mxu0 %v505_v8  ;;  %264 = vmatmul.bf16.vlgmr.msra.gmra.mxu1 %v509_v9 }
  0x2d   :  { %284 = vmatmul.bf16.vlgmr.msra.gmra.mxu2 %v513_v10  ;;  %304 = vmatmul.bf16.vlgmr.msra.gmra.mxu3 %v517_v11 }
  0x3c   :  { %249 = vmatmul.bf16.gmra.mxu0 %v506_v12  ;;  %269 = vmatmul.bf16.gmra.mxu1 %v510_v13 }
  0x3d   :  { %289 = vmatmul.bf16.gmra.mxu2 %v514_v14  ;;  %309 = vmatmul.bf16.gmra.mxu3 %v518_v15 }
  0x4c   :  { %254 = vmatmul.bf16.gmra.mxu0 %v507_v16  ;;  %274 = vmatmul.bf16.gmra.mxu1 %v511_v17 }
  0x4d   :  { %294 = vmatmul.bf16.gmra.mxu2 %v515_v18  ;;  %314 = vmatmul.bf16.gmra.mxu3 %v519_v19 }
  0x5c   :  { %259 = vmatmul.bf16.gmra.mxu0 %v508_v20  ;;  %279 = vmatmul.bf16.gmra.mxu1 %v512_v21 }
  0x5d   :  { %299 = vmatmul.bf16.gmra.mxu2 %v516_v22  ;;  %319 = vmatmul.bf16.gmra.mxu3 %v520_v23 }
  0xa9   :  { %v245_v24 = vpop.f32.mrf.mxu0  ;;  %v265_v25 = vpop.f32.mrf.mxu1 }
  0xb0   :  { %v285_v26 = vpop.f32.mrf.mxu2  ;;  %v305_v27 = vpop.f32.mrf.mxu3 }
  0xb1   :  { %v247_v28 = vpop.f32.mrf.mxu0  ;;  %v267_v29 = vpop.f32.mrf.mxu1 }
  0xb2   :  { %v532_v30 = vpack.c.bf16 %v247_v28, %v245_v24  ;;  %v552_v31 = vpack.c.bf16 %v267_v29, %v265_v25 }
  0xb4   :  { %533 = vst [vmem:[#allocation7] sm:$0xff] %v532_v30  }
  0xb5   :  { %612 = vst [vmem:[#allocation7 + $0x20] sm:$0xff] %v552_v31  }
  0xb8   :  { %v287_v32 = vpop.f32.mrf.mxu2  ;;  %v307_v33 = vpop.f32.mrf.mxu3 }
  0xb9   :  { %v572_v34 = vpack.c.bf16 %v287_v32, %v285_v26  ;;  %v592_v35 = vpack.c.bf16 %v307_v33, %v305_v27  ;;  %v250_v36 = vpop.f32.mrf.mxu0  ;;  %v270_v37 = vpop.f32.mrf.mxu1 }
  0xbb   :  { %616 = vst [vmem:[#allocation7 + $0x40] sm:$0xff] %v572_v34  }
  0xbc   :  { %620 = vst [vmem:[#allocation7 + $0x60] sm:$0xff] %v592_v35  }
  0xc0   :  { %v290_v38 = vpop.f32.mrf.mxu2  ;;  %v310_v39 = vpop.f32.mrf.mxu3 }
  0xc1   :  { %v252_v40 = vpop.f32.mrf.mxu0  ;;  %v272_v41 = vpop.f32.mrf.mxu1 }
  0xc2   :  { %v537_v42 = vpack.c.bf16 %v252_v40, %v250_v36  ;;  %v557_v43 = vpack.c.bf16 %v272_v41, %v270_v37 }
  0xc4   :  { %609 = vst [vmem:[#allocation7 + $0x8] sm:$0xff] %v537_v42  }
  0xc5   :  { %613 = vst [vmem:[#allocation7 + $0x28] sm:$0xff] %v557_v43  }
  0xc8   :  { %v292_v44 = vpop.f32.mrf.mxu2  ;;  %v312_v45 = vpop.f32.mrf.mxu3 }
  0xc9   :  { %v577_v46 = vpack.c.bf16 %v292_v44, %v290_v38  ;;  %v597_v47 = vpack.c.bf16 %v312_v45, %v310_v39  ;;  %v255_v48 = vpop.f32.mrf.mxu0  ;;  %v275_v49 = vpop.f32.mrf.mxu1 }
  0xcb   :  { %617 = vst [vmem:[#allocation7 + $0x48] sm:$0xff] %v577_v46  }
  0xcc   :  { %621 = vst [vmem:[#allocation7 + $0x68] sm:$0xff] %v597_v47  }
  0xd0   :  { %v295_v50 = vpop.f32.mrf.mxu2  ;;  %v315_v51 = vpop.f32.mrf.mxu3 }
  0xd1   :  { %v257_v52 = vpop.f32.mrf.mxu0  ;;  %v277_v53 = vpop.f32.mrf.mxu1 }
  0xd2   :  { %v542_v54 = vpack.c.bf16 %v257_v52, %v255_v48  ;;  %v562_v55 = vpack.c.bf16 %v277_v53, %v275_v49 }
  0xd4   :  { %610 = vst [vmem:[#allocation7 + $0x10] sm:$0xff] %v542_v54  }
  0xd5   :  { %614 = vst [vmem:[#allocation7 + $0x30] sm:$0xff] %v562_v55  }
  0xd8   :  { %v297_v56 = vpop.f32.mrf.mxu2  ;;  %v317_v57 = vpop.f32.mrf.mxu3 }
  0xd9   :  { %v582_v58 = vpack.c.bf16 %v297_v56, %v295_v50  ;;  %v602_v59 = vpack.c.bf16 %v317_v57, %v315_v51  ;;  %v260_v60 = vpop.f32.mrf.mxu0  ;;  %v280_v61 = vpop.f32.mrf.mxu1 }
  0xdb   :  { %618 = vst [vmem:[#allocation7 + $0x50] sm:$0xff] %v582_v58  }
  0xdc   :  { %622 = vst [vmem:[#allocation7 + $0x70] sm:$0xff] %v602_v59  }
  0xe0   :  { %v300_v62 = vpop.f32.mrf.mxu2  ;;  %v320_v63 = vpop.f32.mrf.mxu3 }
  0xe1   :  { %v262_v0 = vpop.f32.mrf.mxu0  ;;  %v282_v1 = vpop.f32.mrf.mxu1 }
  0xe2   :  { %v547_v2 = vpack.c.bf16 %v262_v0, %v260_v60  ;;  %v567_v3 = vpack.c.bf16 %v282_v1, %v280_v61 }
  0xe4   :  { %611 = vst [vmem:[#allocation7 + $0x18] sm:$0xff] %v547_v2  }
  0xe5   :  { %615 = vst [vmem:[#allocation7 + $0x38] sm:$0xff] %v567_v3  }
  0xe8   :  { %v302_v4 = vpop.f32.mrf.mxu2  ;;  %v322_v5 = vpop.f32.mrf.mxu3 }
  0xe9   :  { %v587_v6 = vpack.c.bf16 %v302_v4, %v300_v62  ;;  %v607_v7 = vpack.c.bf16 %v322_v5, %v320_v63 }
  0xeb   :  { %619 = vst [vmem:[#allocation7 + $0x58] sm:$0xff] %v587_v6  }
  0xec   :  { %623 = vst [vmem:[#allocation7 + $0x78] sm:$0xff] %v607_v7  }
  0xed   :  { %401 = dma.vmem_to_hbm [thread:$0]  %s394_s1, 2048, %s396_s23, [#allocation4], %s732_s17, %s732_s17, %s733_s18  }
  0xee   :  { %729 = dma.done.wait [#allocation4], 2048  }
  0xef   :  { %730 = vsyncadd [#allocation4], 4294965248 }
  0xf0   :  { %406 = vsyncpa [#allocation3], 1 }
  0xf1   :  { %407 = vsyncpa [#allocation6], 1 }
  0xf2   :  { %408 = vsyncpa [#allocation4], 1 }

</bundles_post_ra>
